<compile_context>
chip_gen: v5e
topology: v5e:2x2
jax: 0.10.0
libtpu: 0.0.40
codegen_flags: <defaults>
</compile_context>

<pallas_src>
import jax
import jax.numpy as jnp
from jax.experimental import pallas as pl
from jax.experimental.pallas import tpu as pltpu


def _se_gate_conv1x1_kernel(g_ref, x_ref, w_ref, o_ref):
    # g_ref: (B_TILE, C_in)           fp32 -- per-image SE gate logits
    # x_ref: (B_TILE, HW_pad, C_in)   bf16 -- activations (spatial flattened, padded)
    # w_ref: (C_in, C_out)            bf16 -- full transposed 1x1-conv weight
    # o_ref: (B_TILE, HW_pad, C_out)  fp32
    b, hw, cin = x_ref.shape
    cout = w_ref.shape[1]

    gate = jax.nn.sigmoid(g_ref[...]).astype(jnp.bfloat16)      # EUP + cast
    xg = x_ref[...] * gate[:, None, :]                          # bf16 VPU, bcast over HW

    # Flatten (B_TILE, HW_pad, C_in) -> (M, C_in): one big MXU matmul, fp32 acc.
    out = jnp.dot(
        xg.reshape(b * hw, cin), w_ref[...],
        preferred_element_type=jnp.float32,
    )
    o_ref[...] = out.reshape(b, hw, cout).astype(o_ref.dtype)


def _pick_b_tile(n, hw_pad, target_rows=256, max_rows=1024):
    """Smallest divisor of n giving M = b_tile*hw_pad >= target_rows (capped)."""
    cands = [d for d in range(1, n + 1) if n % d == 0 and d * hw_pad <= max_rows]
    if not cands:
        return 1
    for d in cands:
        if d * hw_pad >= target_rows:
            return d
    return cands[-1]


def se_gate_conv1x1_nhwc(gate_nc, x_nhwc, w_cin_cout):
    """Hot path (no layout ops).

    gate_nc:    (N, C_in)            fp32  -- SE gate logits
    x_nhwc:     (N, HW_pad, C_in)    bf16  -- HW_pad a multiple of 8 (zero padded)
    w_cin_cout: (C_in, C_out)        bf16  -- transposed 1x1-conv weight
    returns:    (N, HW_pad, C_out)   fp32
    """
    N, HW_pad, C_in = x_nhwc.shape
    C_out = w_cin_cout.shape[1]

    b_tile = _pick_b_tile(N, HW_pad)
    n_b = N // b_tile

    # Accurate VMEM budget: double-buffered x/gate/out, weight (double-buffered
    # allocation but fetched once since its block index never changes).
    x_bytes = 2 * b_tile * HW_pad * C_in * 2
    g_bytes = 2 * max(b_tile, 8) * C_in * 4
    w_bytes = 2 * C_in * C_out * 2
    o_bytes = 2 * b_tile * HW_pad * C_out * 4
    vmem_limit = max(int((x_bytes + g_bytes + w_bytes + o_bytes) * 1.5) + (1 << 20),
                     4 << 20)

    return pl.pallas_call(
        _se_gate_conv1x1_kernel,
        out_shape=jax.ShapeDtypeStruct((N, HW_pad, C_out), jnp.float32),
        grid_spec=pltpu.PrefetchScalarGridSpec(
            num_scalar_prefetch=0,
            grid=(n_b,),
            in_specs=[
                pl.BlockSpec((b_tile, C_in), lambda b: (b, 0)),             # gate
                pl.BlockSpec((b_tile, HW_pad, C_in), lambda b: (b, 0, 0)),  # x
                pl.BlockSpec((C_in, C_out), lambda b: (0, 0)),              # weight (resident)
            ],
            out_specs=pl.BlockSpec((b_tile, HW_pad, C_out), lambda b: (b, 0, 0)),
        ),
        compiler_params=pltpu.CompilerParams(
            dimension_semantics=("parallel",),
            vmem_limit_bytes=vmem_limit,
        ),
    )(gate_nc, x_nhwc, w_cin_cout)


@jax.jit
def se_gate_conv1x1_nchw(x_nchw, gate_nc11, weight_oi11):
    """Matches the PyTorch module interface: Conv2d_1x1(sigmoid(gate) * x), no bias.

    x_nchw:      (N, C_in, H, W)     fp32
    gate_nc11:   (N, C_in, 1, 1)     fp32
    weight_oi11: (C_out, C_in, 1, 1) fp32
    returns:     (N, C_out, H, W)    fp32
    """
    N, C_in, H, W = x_nchw.shape
    C_out = weight_oi11.shape[0]
    HW = H * W
    HW_pad = ((HW + 7) // 8) * 8  # e.g. 49 -> 56 so flatten is a clean sublane concat

    # One-time layout glue (fused by XLA under jit): NCHW->NHWC transpose with the
    # fp32->bf16 cast folded into the same pass, zero-pad HW, fold weight transpose
    # + bf16 cast. An NHWC/bf16-resident model would call se_gate_conv1x1_nhwc
    # directly with zero layout ops.
    x_nhwc = jnp.transpose(x_nchw, (0, 2, 3, 1)).reshape(N, HW, C_in).astype(jnp.bfloat16)
    if HW_pad != HW:
        x_nhwc = jnp.pad(x_nhwc, ((0, 0), (0, HW_pad - HW), (0, 0)))
    gate = gate_nc11.reshape(N, C_in)                                   # fp32
    w_t = weight_oi11.reshape(C_out, C_in).T.astype(jnp.bfloat16)       # (C_in, C_out)

    out = se_gate_conv1x1_nhwc(gate, x_nhwc, w_t)                       # (N, HW_pad, C_out)
    out = out[:, :HW, :]
    return jnp.transpose(out.reshape(N, H, W, C_out), (0, 3, 1, 2))


if __name__ == "__main__":
    def run_case(N, C_in, C_out, H, W, tol):
        key = jax.random.PRNGKey(0)
        k1, k2, k3 = jax.random.split(key, 3)
        x805 = jax.random.normal(k1, (N, C_in, H, W), dtype=jnp.float32)
        x809 = jax.random.normal(k2, (N, C_in, 1, 1), dtype=jnp.float32)
        weight = jax.random.normal(k3, (C_out, C_in, 1, 1), dtype=jnp.float32) * 0.02

        out = jax.block_until_ready(se_gate_conv1x1_nchw(x805, x809, weight))

        ref = jnp.einsum(
            "nchw,oc->nohw",
            jax.nn.sigmoid(x809) * x805,
            weight.reshape(C_out, C_in),
        )
        assert out.shape == (N, C_out, H, W)
        # bf16 x + bf16 weights + bf16 gate, fp32 accumulation -> loose tolerance.
        assert jnp.allclose(out, ref, atol=tol, rtol=tol), float(
            jnp.max(jnp.abs(out - ref))
        )

    # Small basic shape: no HW padding, whole batch fits in one grid step (M=128).
    run_case(N=2, C_in=256, C_out=128, H=8, W=8, tol=2e-2)
    # Production-like structure, scaled-down channels: 7x7 spatial (HW 49 -> 56 pad),
    # C_out = 384 (3x128 lanes), batch tiled 16 -> B_TILE=8 (M=448), grid of 2 steps.
    run_case(N=16, C_in=128, C_out=384, H=7, W=7, tol=2e-2)

    print("KERNEL_OK")
</pallas_src>

<mosaic_0001>
module attributes {stable_mosaic.version = 11 : i64} {
  func.func @_se_gate_conv1x1_kernel(%arg0: i32, %arg1: memref<2x256xf32, #tpu.memory_space<vmem>>, %arg2: memref<2x64x256xbf16, #tpu.memory_space<vmem>>, %arg3: memref<256x128xbf16, #tpu.memory_space<vmem>>, %arg4: memref<2x64x128xf32, #tpu.memory_space<vmem>>) attributes {dimension_semantics = [#tpu.dimension_semantics<parallel>], iteration_bounds = array<i64: 1>, scalar_prefetch = 0 : i64, scratch_operands = 0 : i64, tpu.core_type = #tpu.core_type<tc>, window_params = [{transform_indices = @transform_0, window_bounds = array<i64: 2, 256>}, {transform_indices = @transform_1, window_bounds = array<i64: 2, 64, 256>}, {pipeline_mode = #tpu.pipeline_mode<synchronous>, transform_indices = @transform_2, window_bounds = array<i64: 256, 128>}, {transform_indices = @transform_3, window_bounds = array<i64: 2, 64, 128>}]} {
    %c0 = arith.constant 0 : index
    %c0_0 = arith.constant 0 : index
    %0 = vector.load %arg1[%c0, %c0_0] : memref<2x256xf32, #tpu.memory_space<vmem>>, vector<2x256xf32>
    %1 = arith.negf %0 : vector<2x256xf32>
    %2 = math.exp %1 : vector<2x256xf32>
    %cst = arith.constant 1.000000e+00 : f32
    %3 = vector.broadcast %cst : f32 to vector<2x256xf32>
    %4 = arith.addf %3, %2 : vector<2x256xf32>
    %5 = arith.divf %3, %4 : vector<2x256xf32>
    %6 = arith.truncf %5 : vector<2x256xf32> to vector<2x256xbf16>
    %c0_1 = arith.constant 0 : index
    %c0_2 = arith.constant 0 : index
    %c0_3 = arith.constant 0 : index
    %7 = vector.load %arg2[%c0_1, %c0_2, %c0_3] : memref<2x64x256xbf16, #tpu.memory_space<vmem>>, vector<2x64x256xbf16>
    %8 = vector.shape_cast %6 : vector<2x256xbf16> to vector<2x1x256xbf16>
    %9 = vector.broadcast %8 : vector<2x1x256xbf16> to vector<2x64x256xbf16>
    %10 = arith.mulf %7, %9 : vector<2x64x256xbf16>
    %11 = vector.shape_cast %10 : vector<2x64x256xbf16> to vector<128x256xbf16>
    %c0_4 = arith.constant 0 : index
    %c0_5 = arith.constant 0 : index
    %12 = vector.load %arg3[%c0_4, %c0_5] : memref<256x128xbf16, #tpu.memory_space<vmem>>, vector<256x128xbf16>
    %cst_6 = arith.constant dense<0.000000e+00> : vector<128x128xf32>
    %13 = tpu.matmul %11, %12, %cst_6 {dimension_numbers = #tpu.dot_dimension_numbers<[1], [0], [0], [1], [0, 0, 1, 1], [], []>} : vector<128x256xbf16>, vector<256x128xbf16>, vector<128x128xf32> -> vector<128x128xf32>
    %14 = vector.shape_cast %13 : vector<128x128xf32> to vector<2x64x128xf32>
    %c0_7 = arith.constant 0 : index
    %c0_8 = arith.constant 0 : index
    %c0_9 = arith.constant 0 : index
    %15 = vector.load %arg4[%c0_7, %c0_8, %c0_9] : memref<2x64x128xf32, #tpu.memory_space<vmem>>, vector<2x64x128xf32>
    tpu.vector_store %arg4[%c0_7, %c0_8, %c0_9], %14 {strides = array<i32>} : memref<2x64x128xf32, #tpu.memory_space<vmem>>, vector<2x64x128xf32>,
    return
  }
  func.func @transform_0(%arg0: i32) -> (i32, i32) {
    %c0_i32 = arith.constant 0 : i32
    %c0_i32_0 = arith.constant 0 : i32
    return %arg0, %c0_i32 : i32, i32
  }
  func.func @transform_1(%arg0: i32) -> (i32, i32, i32) {
    %c0_i32 = arith.constant 0 : i32
    %c0_i32_0 = arith.constant 0 : i32
    %c0_i32_1 = arith.constant 0 : i32
    return %arg0, %c0_i32, %c0_i32_0 : i32, i32, i32
  }
  func.func @transform_2(%arg0: i32) -> (i32, i32) {
    %c0_i32 = arith.constant 0 : i32
    %c0_i32_0 = arith.constant 0 : i32
    %c0_i32_1 = arith.constant 0 : i32
    return %c0_i32, %c0_i32_0 : i32, i32
  }
  func.func @transform_3(%arg0: i32) -> (i32, i32, i32) {
    %c0_i32 = arith.constant 0 : i32
    %c0_i32_0 = arith.constant 0 : i32
    %c0_i32_1 = arith.constant 0 : i32
    return %arg0, %c0_i32, %c0_i32_0 : i32, i32, i32
  }
}

</mosaic_0001>

<bundles_post_ra>
// kernel: se_gate_conv1x1_nchw.1
= control target key start
LH: loop header
LB: loop body
LE: loop exit
PB: predicated region body
PF: predicated region fallthrough
CT: control target
= control target key end

     0   :  { %s809_s0 = inlined_call_operand.vmem [shape: f32[2,256], index: 0, kind: input, shape index: {}]   ;;  %s810_s1 = inlined_call_operand.vmem [shape: bf16[2,64,256], index: 1, kind: input, shape index: {}]   ;;  %s811_s2 = inlined_call_operand.vmem [shape: bf16[256,128], index: 2, kind: input, shape index: {}]   ;;  %s812_s3 = inlined_call_operand.hbm [shape: f32[2,64,128], index: 3, kind: output, shape index: {}]  }
   0x1   :  { %v586_v0 = vld [vmem:[%s811_s2 + $0x38] sm:$0xff]  ;;  %v585_v2 = vld [vmem:[%s811_s2 + $0x30] sm:$0xff]  ;;  %v15_v4 = vld [vmem:[%s809_s0] sm:$0xf] }
   0x2   :  { %v594_v1 = vld [vmem:[%s811_s2 + $0x78] sm:$0xff]  ;;  %381 = vmatpush.bf16.msra.mxu0 %v586_v0  ;;  %v593_v3 = vld [vmem:[%s811_s2 + $0x70] sm:$0xff]  ;;  %595 = vmatpush.bf16.msra.mxu2 %v586_v0 }
   0x3   :  { %430 = vmatpush.bf16.msra.mxu1 %v594_v1  ;;  %603 = vmatpush.bf16.msra.mxu3 %v594_v1 }
   0x4   :  { %8 = vsyncpa [#allocation3], 0  ;;  %v584_v5 = vld [vmem:[%s811_s2 + $0x28] sm:$0xff]  ;;  %v513_v7 = vmul.f32 -1.442695, %v15_v4  ;;  %v583_v8 = vld [vmem:[%s811_s2 + $0x20] sm:$0xff] }
   0x5   :  { %v592_v6 = vld [vmem:[%s811_s2 + $0x68] sm:$0xff]  ;;  %v591_v9 = vld [vmem:[%s811_s2 + $0x60] sm:$0xff]  ;;  %v582_v11 = vld [vmem:[%s811_s2 + $0x18] sm:$0xff]  ;;  %vm60_vm4 = vcmask 1040384   ;;  %s501_s23 = sshll.u32 %s812_s3, 4  ;;  %s645_s24 = smov 128   ;;  %s502_s23 = int_to_ptr.hbm [resolvable:$true] %s501_s23 }
   0x6   :  { %382 = vmatpush.bf16.msra.mxu0 %v585_v2  ;;  %596 = vmatpush.bf16.msra.mxu2 %v585_v2  ;;  %614 = vpow2.f32 %v513_v7  ;;  %v590_v12 = vld [vmem:[%s811_s2 + $0x58] sm:$0xff]  ;;  %v581_v14 = vld [vmem:[%s811_s2 + $0x10] sm:$0xff]  ;;  %v580_v16 = vld [vmem:[%s811_s2 + $0x8] sm:$0xff]  ;;  %s646_s25 = smov 8  }
   0x7   :  { %431 = vmatpush.bf16.msra.mxu1 %v593_v3  ;;  %604 = vmatpush.bf16.msra.mxu3 %v593_v3  ;;  %v589_v15 = vld [vmem:[%s811_s2 + $0x50] sm:$0xff]  ;;  %v588_v17 = vld [vmem:[%s811_s2 + $0x48] sm:$0xff]  ;;  %v579_v21 = vld [vmem:[%s811_s2] sm:$0xff] }
   0x8   :  { %v587_v22 = vld [vmem:[%s811_s2 + $0x40] sm:$0xff]  ;;  %v43_v38 = vld [vmem:[%s810_s1 + $0x8] sm:$0xff]  ;;  %v44_v56 = vld [vmem:[%s810_s1 + $0x10] sm:$0xff] }
   0x9   :  { %v42_v37 = vld [vmem:[%s810_s1] sm:$0xff]  ;;  %v91_v49 = vunpack.c.l.bf16 %v43_v38  ;;  %v92_v50 = vunpack.c.h.bf16 %v43_v38  ;;  %v51_v53 = vld [vmem:[%s810_s1 + $0x48] sm:$0xff]  ;;  %v45_v62 = vld [vmem:[%s810_s1 + $0x18] sm:$0xff]  ;;  %v93_v2 = vunpack.c.l.bf16 %v44_v56 }
   0xa   :  { %383 = vmatpush.bf16.msra.mxu0 %v584_v5  ;;  %597 = vmatpush.bf16.msra.mxu2 %v584_v5  ;;  %v50_v44 = vld [vmem:[%s810_s1 + $0x40] sm:$0xff]  ;;  %v89_v47 = vunpack.c.l.bf16 %v42_v37  ;;  %v90_v48 = vunpack.c.h.bf16 %v42_v37  ;;  %v107_v0 = vunpack.c.l.bf16 %v51_v53  ;;  %v108_v1 = vunpack.c.h.bf16 %v51_v53  ;;  %v52_v3 = vld [vmem:[%s810_s1 + $0x50] sm:$0xff] }
   0xb   :  { %432 = vmatpush.bf16.msra.mxu1 %v592_v6  ;;  %605 = vmatpush.bf16.msra.mxu3 %v592_v6  ;;  %v105_v57 = vunpack.c.l.bf16 %v50_v44  ;;  %v106_v63 = vunpack.c.h.bf16 %v50_v44 }
   0xc   :  { %v615_v10 = vpop.eup %614 }
   0xd   :  { %v19_v13 = vadd.f32 1.0, %v615_v10  ;;  %v94_v10 = vunpack.c.h.bf16 %v44_v56 }
   0xe   :  { %384 = vmatpush.bf16.msra.mxu0 %v583_v8  ;;  %598 = vmatpush.bf16.msra.mxu2 %v583_v8 }
   0xf   :  { %433 = vmatpush.bf16.msra.mxu1 %v591_v9  ;;  %606 = vmatpush.bf16.msra.mxu3 %v591_v9  ;;  %616 = vrcp.f32 %v19_v13  ;;  %v31_v20 = vand.u32 2147483648, %v19_v13  ;;  %vm25_vm0 = vweird.f32 %v19_v13  ;;  %v29_v24 = vand.u32 2147483647, %v19_v13 }
  0x11   :  { %v32_v26 = vor.u32 1.1754944e-38, %v31_v20  ;;  %vm30_vm3 = vcmp.eq.f32.partialorder %v29_v24, 8.507059e+37 }
  0x12   :  { %385 = vmatpush.bf16.msra.mxu0 %v582_v11  ;;  %599 = vmatpush.bf16.msra.mxu2 %v582_v11  ;;  %v95_v11 = vunpack.c.l.bf16 %v45_v62 }
  0x13   :  { %434 = vmatpush.bf16.msra.mxu1 %v590_v12  ;;  %607 = vmatpush.bf16.msra.mxu3 %v590_v12 }
  0x15   :  { %v617_v18 = vpop.eup %616 }
  0x16   :  { %386 = vmatpush.bf16.msra.mxu0 %v581_v14  ;;  %600 = vmatpush.bf16.msra.mxu2 %v581_v14  ;;  %v21_v19 = vmul.f32 %v617_v18, %v19_v13  ;;  %vm26_vm1 = vweird.f32 %v617_v18  ;;  %v96_v14 = vunpack.c.h.bf16 %v45_v62 }
  0x17   :  { %435 = vmatpush.bf16.msra.mxu1 %v589_v15  ;;  %608 = vmatpush.bf16.msra.mxu3 %v589_v15  ;;  %vm27_vm2 = vmor %vm25_vm0, %vm26_vm1  ;;  %v53_v15 = vld [vmem:[%s810_s1 + $0x58] sm:$0xff] }
  0x18   :  { %v22_v23 = vsub.f32 1.0, %v21_v19 }
  0x1a   :  { %387 = vmatpush.bf16.msra.mxu0 %v580_v16  ;;  %601 = vmatpush.bf16.msra.mxu2 %v580_v16  ;;  %v23_v25 = vmul.f32 %v617_v18, %v22_v23  ;;  %v109_v16 = vunpack.c.l.bf16 %v52_v3 }
  0x1b   :  { %436 = vmatpush.bf16.msra.mxu1 %v588_v17  ;;  %609 = vmatpush.bf16.msra.mxu3 %v588_v17 }
  0x1c   :  { %v24_v27 = vadd.f32 %v617_v18, %v23_v25 }
  0x1e   :  { %388 = vmatpush.bf16.msra.mxu0 %v579_v21  ;;  %602 = vmatpush.bf16.msra.mxu2 %v579_v21  ;;  %v28_v28 = vsel %vm27_vm2, %v617_v18, %v24_v27  ;;  %v110_v27 = vunpack.c.h.bf16 %v52_v3 }
  0x1f   :  { %437 = vmatpush.bf16.msra.mxu1 %v587_v22  ;;  %610 = vmatpush.bf16.msra.mxu3 %v587_v22  ;;  %v33_v29 = vsel %vm30_vm3, %v32_v26, %v28_v28  ;;  %v111_v28 = vunpack.c.l.bf16 %v53_v15 }
  0x20   :  { %36 = vst [vmem:[#allocation1] ss:$4 sm:$0xff] %v33_v29 }
  0x27   :  { %v37_v30 = vld.sshfl [vmem:[#allocation1] sm:$0xff pattern:$0x73625140]  ;;  %v38_v31 = vld.sshfl [vmem:[#allocation1 + $0x8] sm:$0xff pattern:$0x73625140] }
  0x28   :  { %v41_v32 = vpack.c.bf16 %v38_v31, %v37_v30 }
  0x2a   :  { %v59_v33 = vrot.slane %v41_v32, 3 }
  0x2c   :  { %v63_v34 = vsel %vm60_vm4, %v41_v32, %v59_v33  ;;  %v112_v32 = vunpack.c.h.bf16 %v53_v15 }
  0x2d   :  { %v514_v35 = vpack.i.b16 %v63_v34, %v63_v34  ;;  %v66_v36 = vunpack.i.h.s16 %v63_v34 }
  0x2f   :  { %v69_v39 = vperm.slane %v514_v35, 0  ;;  %v70_v40 = vperm.slane %v514_v35, 1  ;;  %v68_v41 = vpack.i.b16 %v66_v36, %v66_v36 }
  0x31   :  { %v74_v42 = vpack.i.b16 %v69_v39, %v69_v39  ;;  %v78_v43 = vpack.i.b16 %v70_v40, %v70_v40  ;;  %v71_v45 = vperm.slane %v68_v41, 0  ;;  %v72_v46 = vperm.slane %v68_v41, 1 }
  0x33   :  { %v76_v51 = vperm.slane %v74_v42, 0  ;;  %v80_v52 = vperm.slane %v78_v43, 0  ;;  %v82_v54 = vpack.i.b16 %v71_v45, %v71_v45  ;;  %v86_v55 = vpack.i.b16 %v72_v46, %v72_v46 }
  0x35   :  { %v733_v58 = vunpack.c.l.bf16 %v76_v51  ;;  %v735_v59 = vunpack.c.l.bf16 %v80_v52  ;;  %v84_v60 = vperm.slane %v82_v54, 0  ;;  %v88_v61 = vperm.slane %v86_v55, 0  ;;  %v47_v55 = vld [vmem:[%s810_s1 + $0x28] sm:$0xff] }
  0x36   :  { %v99_v3 = vunpack.c.l.bf16 %v47_v55 }
  0x37   :  { %v125_v4 = vmul.f32 %v733_v58, %v89_v47  ;;  %v126_v5 = vmul.f32 %v735_v59, %v90_v48  ;;  %v127_v6 = vmul.f32 %v733_v58, %v91_v49  ;;  %v128_v7 = vmul.f32 %v735_v59, %v92_v50  ;;  %v46_v50 = vld [vmem:[%s810_s1 + $0x20] sm:$0xff] }
  0x38   :  { %v747_v8 = vunpack.c.l.bf16 %v84_v60  ;;  %v749_v9 = vunpack.c.l.bf16 %v88_v61  ;;  %v129_v31 = vmul.f32 %v733_v58, %v93_v2  ;;  %v130_v37 = vmul.f32 %v735_v59, %v94_v10 }
  0x39   :  { %v157_v12 = vpack.c.bf16 %v126_v5, %v125_v4  ;;  %v158_v13 = vpack.c.bf16 %v128_v7, %v127_v6  ;;  %v131_v38 = vmul.f32 %v733_v58, %v95_v11  ;;  %v132_v39 = vmul.f32 %v735_v59, %v96_v14  ;;  %v55_v5 = vld [vmem:[%s810_s1 + $0x68] sm:$0xff] }
  0x3a   :  { %v141_v17 = vmul.f32 %v747_v8, %v105_v57  ;;  %v142_v18 = vmul.f32 %v749_v9, %v106_v63  ;;  %v143_v19 = vmul.f32 %v747_v8, %v107_v0  ;;  %v144_v20 = vmul.f32 %v749_v9, %v108_v1  ;;  %v54_v0 = vld [vmem:[%s810_s1 + $0x60] sm:$0xff] }
  0x3b   :  { %v221_v21 = vunpack.c.l.b16 %v157_v12  ;;  %v223_v22 = vunpack.c.l.b16 %v158_v13  ;;  %v222_v23 = vunpack.c.h.b16 %v157_v12  ;;  %v224_v24 = vunpack.c.h.b16 %v158_v13 }
  0x3c   :  { %v165_v25 = vpack.c.bf16 %v142_v18, %v141_v17  ;;  %v166_v26 = vpack.c.bf16 %v144_v20, %v143_v19  ;;  %v145_v42 = vmul.f32 %v747_v8, %v109_v16  ;;  %v146_v43 = vmul.f32 %v749_v9, %v110_v27 }
  0x3d   :  { %v253_v29 = vpack.c.b16 %v223_v22, %v221_v21  ;;  %v254_v30 = vpack.c.b16 %v224_v24, %v222_v23  ;;  %v147_v44 = vmul.f32 %v747_v8, %v111_v28  ;;  %v148_v45 = vmul.f32 %v749_v9, %v112_v32 }
  0x3e   :  { %v237_v33 = vunpack.c.l.b16 %v165_v25  ;;  %v239_v34 = vunpack.c.l.b16 %v166_v26  ;;  %v238_v35 = vunpack.c.h.b16 %v165_v25  ;;  %v240_v36 = vunpack.c.h.b16 %v166_v26  ;;  %v48_v26 = vld [vmem:[%s810_s1 + $0x30] sm:$0xff] }
  0x3f   :  { %389 = vmatmul.bf16.vlgmr.msra.gmra.mxu0 %v253_v29  ;;  %438 = vmatmul.bf16.vlgmr.msra.gmra.mxu1 %v254_v30  ;;  %v159_v46 = vpack.c.bf16 %v130_v37, %v129_v31  ;;  %v160_v47 = vpack.c.bf16 %v132_v39, %v131_v38  ;;  %v167_v48 = vpack.c.bf16 %v146_v43, %v145_v42  ;;  %v97_v56 = vunpack.c.l.bf16 %v46_v50  ;;  %v49_v31 = vld [vmem:[%s810_s1 + $0x38] sm:$0xff]  ;;  %v56_v38 = vld [vmem:[%s810_s1 + $0x70] sm:$0xff] }
  0x40   :  { %v261_v40 = vpack.c.b16 %v239_v34, %v237_v33  ;;  %v262_v41 = vpack.c.b16 %v240_v36, %v238_v35  ;;  %v168_v49 = vpack.c.bf16 %v148_v45, %v147_v44  ;;  %v98_v57 = vunpack.c.h.bf16 %v46_v50  ;;  %v57_v43 = vld [vmem:[%s810_s1 + $0x78] sm:$0xff]  ;;  %s644_s1 = smov [#allocation2]  }
  0x41   :  { %v225_v51 = vunpack.c.l.b16 %v159_v46  ;;  %v227_v52 = vunpack.c.l.b16 %v160_v47  ;;  %v226_v53 = vunpack.c.h.b16 %v159_v46  ;;  %v228_v54 = vunpack.c.h.b16 %v160_v47  ;;  %s499_s20 = sshll.u32 %s644_s1, 4  ;;  %s500_s20 = int_to_ptr.vmem [resolvable:$true] %s499_s20 }
  0x42   :  { %409 = vmatmul.bf16.vlgmr.msra.gmra.mxu2 %v261_v40  ;;  %458 = vmatmul.bf16.vlgmr.msra.gmra.mxu3 %v262_v41  ;;  %v241_v60 = vunpack.c.l.b16 %v167_v48  ;;  %v243_v61 = vunpack.c.l.b16 %v168_v49  ;;  %v242_v62 = vunpack.c.h.b16 %v167_v48  ;;  %v244_v63 = vunpack.c.h.b16 %v168_v49 }
  0x43   :  { %v255_v1 = vpack.c.b16 %v227_v52, %v225_v51  ;;  %v256_v2 = vpack.c.b16 %v228_v54, %v226_v53  ;;  %v100_v4 = vunpack.c.h.bf16 %v47_v55  ;;  %v133_v6 = vmul.f32 %v733_v58, %v97_v56 }
  0x44   :  { %v113_v7 = vunpack.c.l.bf16 %v54_v0  ;;  %v114_v10 = vunpack.c.h.bf16 %v54_v0  ;;  %v263_v11 = vpack.c.b16 %v243_v61, %v241_v60  ;;  %v264_v12 = vpack.c.b16 %v244_v63, %v242_v62 }
  0x45   :  { %v115_v13 = vunpack.c.l.bf16 %v55_v5  ;;  %v116_v14 = vunpack.c.h.bf16 %v55_v5  ;;  %v134_v15 = vmul.f32 %v735_v59, %v98_v57  ;;  %v135_v16 = vmul.f32 %v733_v58, %v99_v3 }
  0x46   :  { %v136_v17 = vmul.f32 %v735_v59, %v100_v4  ;;  %v149_v18 = vmul.f32 %v747_v8, %v113_v7  ;;  %v150_v19 = vmul.f32 %v749_v9, %v114_v10  ;;  %v101_v32 = vunpack.c.l.bf16 %v48_v26 }
  0x47   :  { %v151_v20 = vmul.f32 %v747_v8, %v115_v13  ;;  %v152_v21 = vmul.f32 %v749_v9, %v116_v14  ;;  %v161_v22 = vpack.c.bf16 %v134_v15, %v133_v6  ;;  %v102_v33 = vunpack.c.h.bf16 %v48_v26 }
  0x48   :  { %v162_v23 = vpack.c.bf16 %v136_v17, %v135_v16  ;;  %v169_v24 = vpack.c.bf16 %v150_v19, %v149_v18  ;;  %v103_v41 = vunpack.c.l.bf16 %v49_v31  ;;  %v104_v42 = vunpack.c.h.bf16 %v49_v31 }
  0x49   :  { %v170_v25 = vpack.c.bf16 %v152_v21, %v151_v20  ;;  %v229_v27 = vunpack.c.l.b16 %v161_v22  ;;  %v230_v29 = vunpack.c.h.b16 %v161_v22  ;;  %v137_v44 = vmul.f32 %v733_v58, %v101_v32 }
  0x4a   :  { %v231_v28 = vunpack.c.l.b16 %v162_v23  ;;  %v232_v30 = vunpack.c.h.b16 %v162_v23  ;;  %v245_v34 = vunpack.c.l.b16 %v169_v24  ;;  %v246_v36 = vunpack.c.h.b16 %v169_v24 }
  0x4b   :  { %v247_v35 = vunpack.c.l.b16 %v170_v25  ;;  %v248_v37 = vunpack.c.h.b16 %v170_v25  ;;  %v117_v45 = vunpack.c.l.bf16 %v56_v38  ;;  %v118_v46 = vunpack.c.h.bf16 %v56_v38 }
  0x4c   :  { %v257_v39 = vpack.c.b16 %v231_v28, %v229_v27  ;;  %v258_v40 = vpack.c.b16 %v232_v30, %v230_v29  ;;  %v119_v49 = vunpack.c.l.bf16 %v57_v43  ;;  %v120_v50 = vunpack.c.h.bf16 %v57_v43 }
  0x4d   :  { %v265_v47 = vpack.c.b16 %v247_v35, %v245_v34  ;;  %v266_v48 = vpack.c.b16 %v248_v37, %v246_v36  ;;  %v138_v51 = vmul.f32 %v735_v59, %v102_v33  ;;  %v139_v52 = vmul.f32 %v733_v58, %v103_v41 }
  0x4e   :  { %v140_v53 = vmul.f32 %v735_v59, %v104_v42  ;;  %v153_v54 = vmul.f32 %v747_v8, %v117_v45  ;;  %v154_v55 = vmul.f32 %v749_v9, %v118_v46  ;;  %v155_v56 = vmul.f32 %v747_v8, %v119_v49 }
  0x4f   :  { %394 = vmatmul.bf16.gmra.mxu0 %v255_v1  ;;  %443 = vmatmul.bf16.gmra.mxu1 %v256_v2  ;;  %v156_v57 = vmul.f32 %v749_v9, %v120_v50  ;;  %v163_v60 = vpack.c.bf16 %v138_v51, %v137_v44 }
  0x50   :  { %v164_v61 = vpack.c.bf16 %v140_v53, %v139_v52  ;;  %v171_v62 = vpack.c.bf16 %v154_v55, %v153_v54 }
  0x51   :  { %v172_v63 = vpack.c.bf16 %v156_v57, %v155_v56  ;;  %v233_v0 = vunpack.c.l.b16 %v163_v60  ;;  %v234_v2 = vunpack.c.h.b16 %v163_v60 }
  0x52   :  { %414 = vmatmul.bf16.gmra.mxu2 %v263_v11  ;;  %463 = vmatmul.bf16.gmra.mxu3 %v264_v12  ;;  %v235_v1 = vunpack.c.l.b16 %v164_v61  ;;  %v236_v58 = vunpack.c.h.b16 %v164_v61  ;;  %v249_v3 = vunpack.c.l.b16 %v171_v62  ;;  %v250_v4 = vunpack.c.h.b16 %v171_v62 }
  0x53   :  { %v251_v59 = vunpack.c.l.b16 %v172_v63  ;;  %v252_v5 = vunpack.c.h.b16 %v172_v63 }
  0x54   :  { %v259_v6 = vpack.c.b16 %v235_v1, %v233_v0  ;;  %v260_v7 = vpack.c.b16 %v236_v58, %v234_v2 }
  0x55   :  { %v267_v10 = vpack.c.b16 %v251_v59, %v249_v3  ;;  %v268_v11 = vpack.c.b16 %v252_v5, %v250_v4 }
  0x5f   :  { %399 = vmatmul.bf16.gmra.mxu0 %v257_v39  ;;  %448 = vmatmul.bf16.gmra.mxu1 %v258_v40 }
  0x62   :  { %419 = vmatmul.bf16.gmra.mxu2 %v265_v47  ;;  %468 = vmatmul.bf16.gmra.mxu3 %v266_v48 }
  0x6f   :  { %404 = vmatmul.bf16.gmra.mxu0 %v259_v6  ;;  %453 = vmatmul.bf16.gmra.mxu1 %v260_v7 }
  0x72   :  { %424 = vmatmul.bf16.gmra.mxu2 %v267_v10  ;;  %473 = vmatmul.bf16.gmra.mxu3 %v268_v11 }
  0xbc   :  { %v390_v8 = vpop.f32.mrf.mxu0  ;;  %v439_v9 = vpop.f32.mrf.mxu1 }
  0xbd   :  { %v440_v12 = vadd.f32 %v439_v9, %v390_v8 }
  0xbf   :  { %479 = vst [vmem:[#allocation2] sm:$0xff] %v440_v12 }
  0xc4   :  { %v392_v13 = vpop.f32.mrf.mxu0  ;;  %v441_v14 = vpop.f32.mrf.mxu1 }
  0xc5   :  { %v410_v15 = vpop.f32.mrf.mxu2  ;;  %v442_v16 = vadd.f32 %v441_v14, %v392_v13  ;;  %v459_v17 = vpop.f32.mrf.mxu3 }
  0xc6   :  { %v460_v18 = vadd.f32 %v459_v17, %v410_v15 }
  0xc7   :  { %480 = vst [vmem:[#allocation2 + $0x8] sm:$0xff] %v442_v16 }
  0xc8   :  { %487 = vst [vmem:[#allocation2 + $0x40] sm:$0xff] %v460_v18 }
  0xcc   :  { %v395_v19 = vpop.f32.mrf.mxu0  ;;  %v444_v20 = vpop.f32.mrf.mxu1 }
  0xcd   :  { %v412_v21 = vpop.f32.mrf.mxu2  ;;  %v445_v22 = vadd.f32 %v444_v20, %v395_v19  ;;  %v461_v23 = vpop.f32.mrf.mxu3 }
  0xce   :  { %v462_v24 = vadd.f32 %v461_v23, %v412_v21 }
  0xcf   :  { %481 = vst [vmem:[#allocation2 + $0x10] sm:$0xff] %v445_v22 }
  0xd0   :  { %488 = vst [vmem:[#allocation2 + $0x48] sm:$0xff] %v462_v24 }
  0xd4   :  { %v397_v25 = vpop.f32.mrf.mxu0  ;;  %v446_v26 = vpop.f32.mrf.mxu1 }
  0xd5   :  { %v415_v27 = vpop.f32.mrf.mxu2  ;;  %v447_v28 = vadd.f32 %v446_v26, %v397_v25  ;;  %v464_v29 = vpop.f32.mrf.mxu3 }
  0xd6   :  { %v465_v30 = vadd.f32 %v464_v29, %v415_v27 }
  0xd7   :  { %482 = vst [vmem:[#allocation2 + $0x18] sm:$0xff] %v447_v28 }
  0xd8   :  { %489 = vst [vmem:[#allocation2 + $0x50] sm:$0xff] %v465_v30 }
  0xdc   :  { %v400_v31 = vpop.f32.mrf.mxu0  ;;  %v449_v32 = vpop.f32.mrf.mxu1 }
  0xdd   :  { %v417_v33 = vpop.f32.mrf.mxu2  ;;  %v450_v34 = vadd.f32 %v449_v32, %v400_v31  ;;  %v466_v35 = vpop.f32.mrf.mxu3 }
  0xde   :  { %v467_v36 = vadd.f32 %v466_v35, %v417_v33 }
  0xdf   :  { %483 = vst [vmem:[#allocation2 + $0x20] sm:$0xff] %v450_v34 }
  0xe0   :  { %490 = vst [vmem:[#allocation2 + $0x58] sm:$0xff] %v467_v36 }
  0xe4   :  { %v402_v37 = vpop.f32.mrf.mxu0  ;;  %v451_v38 = vpop.f32.mrf.mxu1 }
  0xe5   :  { %v420_v39 = vpop.f32.mrf.mxu2  ;;  %v452_v40 = vadd.f32 %v451_v38, %v402_v37  ;;  %v469_v41 = vpop.f32.mrf.mxu3 }
  0xe6   :  { %v470_v42 = vadd.f32 %v469_v41, %v420_v39 }
  0xe7   :  { %484 = vst [vmem:[#allocation2 + $0x28] sm:$0xff] %v452_v40 }
  0xe8   :  { %491 = vst [vmem:[#allocation2 + $0x60] sm:$0xff] %v470_v42 }
  0xec   :  { %v405_v43 = vpop.f32.mrf.mxu0  ;;  %v454_v44 = vpop.f32.mrf.mxu1 }
  0xed   :  { %v422_v45 = vpop.f32.mrf.mxu2  ;;  %v455_v46 = vadd.f32 %v454_v44, %v405_v43  ;;  %v471_v47 = vpop.f32.mrf.mxu3 }
  0xee   :  { %v472_v48 = vadd.f32 %v471_v47, %v422_v45 }
  0xef   :  { %485 = vst [vmem:[#allocation2 + $0x30] sm:$0xff] %v455_v46 }
  0xf0   :  { %492 = vst [vmem:[#allocation2 + $0x68] sm:$0xff] %v472_v48 }
  0xf4   :  { %v407_v49 = vpop.f32.mrf.mxu0  ;;  %v456_v50 = vpop.f32.mrf.mxu1 }
  0xf5   :  { %v425_v51 = vpop.f32.mrf.mxu2  ;;  %v457_v52 = vadd.f32 %v456_v50, %v407_v49  ;;  %v474_v53 = vpop.f32.mrf.mxu3 }
  0xf6   :  { %v475_v54 = vadd.f32 %v474_v53, %v425_v51 }
  0xf7   :  { %486 = vst [vmem:[#allocation2 + $0x38] sm:$0xff] %v457_v52 }
  0xf8   :  { %493 = vst [vmem:[#allocation2 + $0x70] sm:$0xff] %v475_v54 }
  0xfd   :  { %v427_v55 = vpop.f32.mrf.mxu2  ;;  %v476_v56 = vpop.f32.mrf.mxu3 }
  0xfe   :  { %v477_v57 = vadd.f32 %v476_v56, %v427_v55 }
 0x100   :  { %494 = vst [vmem:[#allocation2 + $0x78] sm:$0xff] %v477_v57 }
 0x101   :  { %507 = dma.vmem_to_hbm [thread:$0]  %s500_s20, 2048, %s502_s23, [#allocation3], %s645_s24, %s645_s24, %s646_s25  }
 0x102   :  { %642 = dma.done.wait [#allocation3], 2048  }
 0x103   :  { %643 = vsyncadd [#allocation3], 4294965248 }
 0x104   :  { %512 = vsyncpa [#allocation3], 1 }

</bundles_post_ra>
